<compile_context>
chip_gen: v7x
topology: tpu7x:2x2x1
jax: 0.10.0
libtpu: 0.0.40
codegen_flags: <defaults>
</compile_context>

<pallas_src>
import jax
import jax.numpy as jnp
from jax import lax
from jax.experimental import pallas as pl
from jax.experimental.pallas import tpu as pltpu


def _vmem_capacity_bytes():
    """Physical VMEM of the current TPU generation (conservative fallback)."""
    try:
        return int(pltpu.get_tpu_info().vmem_capacity_bytes)
    except Exception:
        return 64 * 1024 * 1024  # assume v7x (smallest current generation)


def channel_attention(x_nchw, w1, w2, *, force_two_phase=False,
                      two_phase_hw_block=None):
    """x_nchw: (N, C, H, W); w1: (C//r, C, 1, 1); w2: (C, C//r, 1, 1)."""
    N, C, H, W = x_nchw.shape
    HW = H * W
    hidden = w1.shape[0]
    dtype = x_nchw.dtype
    itemsize = jnp.dtype(dtype).itemsize

    # NCHW-native: reshapes only (no transpose / extra HBM traffic for x).
    x = x_nchw.reshape(N, C, HW)                                 # (N, C, HW)
    w1m = w1.reshape(hidden, C).astype(jnp.float32)              # (hidden, C)
    w2t = jnp.transpose(w2.reshape(C, hidden), (1, 0)).astype(jnp.float32)  # (hidden, C)

    # ---------------- VMEM budgeting (generation-aware) -------------------
    vmem_cap = _vmem_capacity_bytes()
    vmem_limit = int(min(vmem_cap * 3 // 4, 100 << 20))   # ~48 MiB v7x, ~96-100 MiB v5e/v6e
    weight_bytes = 2 * hidden * C * 4                     # two f32 (hidden, C) tiles
    headroom = 4 << 20
    # Live footprint of the fused kernel: 2 in + 2 out double-buffered blocks
    # plus double-buffered weight tiles.
    live_budget = max(1 << 20, vmem_limit - 4 * weight_bytes - headroom)
    per_buffer_cap = (16 << 20) if vmem_cap >= (96 << 20) else (10 << 20)
    block_budget = min(max(1 << 20, live_budget // 4), per_buffer_cap)

    bytes_per_image = C * HW * itemsize
    use_two_phase = force_two_phase or bytes_per_image > block_budget

    if not use_two_phase:
        # ------------------------ fused single-pass path -------------------
        nb = max(1, block_budget // bytes_per_image)
        # Pipeline depth: keep >= 8 grid steps when possible (>= 4 when N >= 4
        # so both v7x TensorCores get pipelined work).
        if N >= 8:
            nb = min(nb, N // 8)
        elif N >= 4:
            nb = min(nb, N // 4)
        elif N >= 2:
            nb = min(nb, N // 2)
        nb = max(1, nb)
        grid = (pl.cdiv(N, nb),)                     # ragged last block is OK:
        use_vpu_mlp = hidden <= 8                    # each row is independent.

        def kernel(x_ref, w1_ref, w2t_ref, o_ref):
            blk = x_ref.shape[0]
            hw = x_ref.shape[2]
            inv_hw = 1.0 / hw

            # Single read of the slab for both pools (one VMEM pass).
            xv = x_ref[...]                                            # (blk, C, HW)
            avg = jnp.sum(xv, axis=-1, dtype=jnp.float32) * inv_hw     # (blk, C)
            mx = jnp.max(xv, axis=-1).astype(jnp.float32)              # (blk, C)

            # Fuse the two MLP calls: stack avg/max on sublanes.
            pooled = jnp.concatenate([avg, mx], axis=0)                # (2*blk, C)

            if use_vpu_mlp:
                # Tiny hidden dim: VPU broadcast-MAC keeps C on lanes and
                # skips the MXU push/pop + relayout latency entirely.
                out = jnp.zeros((2 * blk, C), jnp.float32)
                for j in range(hidden):  # static, <= 8 iterations
                    hj = jnp.maximum(
                        jnp.sum(pooled * w1_ref[j:j + 1, :], axis=-1,
                                keepdims=True), 0.0)                   # (2*blk, 1)
                    out = out + hj * w2t_ref[j:j + 1, :]               # (2*blk, C)
            else:
                h = jnp.maximum(
                    lax.dot_general(
                        pooled, w1_ref[...],
                        dimension_numbers=(((1,), (1,)), ((), ())),
                        preferred_element_type=jnp.float32),
                    0.0)                                               # (2*blk, hidden)
                out = jnp.dot(h, w2t_ref[...],
                              preferred_element_type=jnp.float32)      # (2*blk, C)

            scale = jax.nn.sigmoid(out[:blk] + out[blk:]).astype(o_ref.dtype)
            # Final multiply in the input dtype (no full-slab f32 round trip).
            o_ref[...] = x_ref[...] * scale[:, :, None]

        cost = pl.CostEstimate(
            flops=int(8 * N * C * hidden + 3 * N * C * HW),
            transcendentals=int(N * C),
            bytes_accessed=int(2 * N * C * HW * itemsize + 2 * weight_bytes),
        )

        out = pl.pallas_call(
            kernel,
            out_shape=jax.ShapeDtypeStruct((N, C, HW), dtype),
            grid=grid,
            in_specs=[
                pl.BlockSpec((nb, C, HW), lambda n: (n, 0, 0)),
                pl.BlockSpec((hidden, C), lambda n: (0, 0)),
                pl.BlockSpec((hidden, C), lambda n: (0, 0)),
            ],
            out_specs=pl.BlockSpec((nb, C, HW), lambda n: (n, 0, 0)),
            compiler_params=pltpu.CompilerParams(
                dimension_semantics=("parallel",),
                vmem_limit_bytes=vmem_limit,
            ),
            cost_estimate=cost,
        )(x, w1m, w2t)
        return out.reshape(N, C, H, W)

    # --------------- two-phase fallback: one image > VMEM budget ----------
    # Phase 1: HW-tiled pooling with (N, 1, C) accumulators.
    thw = two_phase_hw_block if two_phase_hw_block is not None else max(
        128, min(block_budget // max(1, C * itemsize), HW))
    if thw >= HW:
        thw = HW
    else:
        thw = max(128, (thw // 128) * 128)
    n_hw = pl.cdiv(HW, thw)

    def pool_kernel(x_ref, sum_ref, max_ref):
        h = pl.program_id(1)

        @pl.when(h == 0)
        def _():
            sum_ref[...] = jnp.zeros_like(sum_ref)
            max_ref[...] = jnp.full_like(max_ref, -jnp.inf)

        xv = x_ref[...].astype(jnp.float32)                        # (1, C, thw)
        # Mask lanes beyond HW for the ragged last chunk.
        pos = h * thw + lax.broadcasted_iota(jnp.int32, xv.shape, 2)
        valid = pos < HW
        sum_ref[...] += jnp.sum(jnp.where(valid, xv, 0.0), axis=-1)[:, None, :]
        max_ref[...] = jnp.maximum(
            max_ref[...],
            jnp.max(jnp.where(valid, xv, -jnp.inf), axis=-1)[:, None, :])

    pool_sum, pool_max = pl.pallas_call(
        pool_kernel,
        out_shape=(jax.ShapeDtypeStruct((N, 1, C), jnp.float32),
                   jax.ShapeDtypeStruct((N, 1, C), jnp.float32)),
        grid=(N, n_hw),
        in_specs=[pl.BlockSpec((1, C, thw), lambda n, h: (n, 0, h))],
        out_specs=(pl.BlockSpec((1, 1, C), lambda n, h: (n, 0, 0)),
                   pl.BlockSpec((1, 1, C), lambda n, h: (n, 0, 0))),
        compiler_params=pltpu.CompilerParams(
            dimension_semantics=("parallel", "arbitrary"),
            vmem_limit_bytes=vmem_limit,
        ),
    )(x)

    # Tiny (N, C) MLP: negligible work, done in plain JAX between the two
    # bandwidth-bound kernels.
    avg = pool_sum.reshape(N, C) * (1.0 / HW)
    mx = pool_max.reshape(N, C)
    h_avg = jnp.maximum(avg @ w1m.T, 0.0)
    h_max = jnp.maximum(mx @ w1m.T, 0.0)
    scale = jax.nn.sigmoid(h_avg @ w2t + h_max @ w2t)
    scale = scale.astype(dtype).reshape(N, C, 1)

    # Phase 2: HW-tiled elementwise multiply (input dtype, lane-dense stores).
    def mul_kernel(x_ref, s_ref, o_ref):
        o_ref[...] = x_ref[...] * s_ref[...]

    out = pl.pallas_call(
        mul_kernel,
        out_shape=jax.ShapeDtypeStruct((N, C, HW), dtype),
        grid=(N, n_hw),
        in_specs=[pl.BlockSpec((1, C, thw), lambda n, h: (n, 0, h)),
                  pl.BlockSpec((1, C, 1), lambda n, h: (n, 0, 0))],
        out_specs=pl.BlockSpec((1, C, thw), lambda n, h: (n, 0, h)),
        compiler_params=pltpu.CompilerParams(
            dimension_semantics=("parallel", "parallel"),
            vmem_limit_bytes=vmem_limit,
        ),
        cost_estimate=pl.CostEstimate(
            flops=int(N * C * HW),
            transcendentals=0,
            bytes_accessed=int(2 * N * C * HW * itemsize),
        ),
    )(x, scale)
    return out.reshape(N, C, H, W)


def channel_attention_ref(x, w1, w2):
    """Pure-JAX reference mirroring the PyTorch module (NCHW)."""
    N, C, H, W = x.shape
    hidden = w1.shape[0]
    w1m = w1.reshape(hidden, C)
    w2m = w2.reshape(C, hidden)
    avg = jnp.mean(x, axis=(2, 3))          # (N, C)
    mx = jnp.max(x, axis=(2, 3))            # (N, C)

    def mlp(p):
        h = jnp.maximum(p @ w1m.T, 0.0)
        return h @ w2m.T

    scale = jax.nn.sigmoid(mlp(avg) + mlp(mx))          # (N, C)
    return x * scale[:, :, None, None]


def _make_inputs(key, N, C, H, W, reduction_ratio):
    hidden = max(1, C // reduction_ratio)
    kx, k1, k2 = jax.random.split(key, 3)
    x = jax.random.normal(kx, (N, C, H, W), dtype=jnp.float32)
    w1 = jax.random.normal(k1, (hidden, C, 1, 1), dtype=jnp.float32) * 0.1
    w2 = jax.random.normal(k2, (C, hidden, 1, 1), dtype=jnp.float32) * 0.1
    return x, w1, w2


if __name__ == "__main__":
    key = jax.random.PRNGKey(0)
    k1, k2, k3 = jax.random.split(key, 3)

    # Test 1: fused path, small hidden (VPU MLP branch).
    x, w1, w2 = _make_inputs(k1, N=2, C=32, H=16, W=16, reduction_ratio=16)
    y = jax.block_until_ready(channel_attention(x, w1, w2))
    y_ref = channel_attention_ref(x, w1, w2)
    assert y.shape == x.shape
    assert jnp.allclose(y, y_ref, atol=1e-5, rtol=1e-5), "fused (VPU MLP) mismatch"

    # Test 2: fused path, larger hidden (MXU MLP branch).
    x2, w12, w22 = _make_inputs(k2, N=2, C=64, H=8, W=8, reduction_ratio=4)
    y2 = jax.block_until_ready(channel_attention(x2, w12, w22))
    y2_ref = channel_attention_ref(x2, w12, w22)
    assert jnp.allclose(y2, y2_ref, atol=1e-5, rtol=1e-5), "fused (MXU MLP) mismatch"

    # Test 3: two-phase fallback (HW-tiled pooling + multiply, ragged HW chunk).
    x3, w13, w23 = _make_inputs(k3, N=2, C=32, H=12, W=12, reduction_ratio=16)
    y3 = jax.block_until_ready(
        channel_attention(x3, w13, w23, force_two_phase=True,
                          two_phase_hw_block=128))
    y3_ref = channel_attention_ref(x3, w13, w23)
    assert jnp.allclose(y3, y3_ref, atol=1e-5, rtol=1e-5), "two-phase mismatch"

    print("KERNEL_OK")
</pallas_src>

<mosaic_0001>
module attributes {stable_mosaic.version = 11 : i64} {
  func.func @kernel(%arg0: i32, %arg1: memref<1x32x256xf32, #tpu.memory_space<vmem>>, %arg2: memref<2x32xf32, #tpu.memory_space<vmem>>, %arg3: memref<2x32xf32, #tpu.memory_space<vmem>>, %arg4: memref<1x32x256xf32, #tpu.memory_space<vmem>>) attributes {dimension_semantics = [#tpu.dimension_semantics<parallel>], iteration_bounds = array<i64: 2>, scalar_prefetch = 0 : i64, scratch_operands = 0 : i64, tpu.core_type = #tpu.core_type<tc>, window_params = [{transform_indices = @transform_0, window_bounds = array<i64: 1, 32, 256>}, {pipeline_mode = #tpu.pipeline_mode<synchronous>, transform_indices = @transform_1, window_bounds = array<i64: 2, 32>}, {pipeline_mode = #tpu.pipeline_mode<synchronous>, transform_indices = @transform_2, window_bounds = array<i64: 2, 32>}, {transform_indices = @transform_3, window_bounds = array<i64: 1, 32, 256>}]} {
    %c0 = arith.constant 0 : index
    %c0_0 = arith.constant 0 : index
    %c0_1 = arith.constant 0 : index
    %0 = vector.load %arg1[%c0, %c0_0, %c0_1] : memref<1x32x256xf32, #tpu.memory_space<vmem>>, vector<1x32x256xf32>
    %cst = arith.constant dense<0.000000e+00> : vector<1x32xf32>
    %1 = vector.multi_reduction <add>, %0, %cst [2] : vector<1x32x256xf32> to vector<1x32xf32>
    %cst_2 = arith.constant 3.906250e-03 : f32
    %2 = vector.broadcast %cst_2 : f32 to vector<1x32xf32>
    %3 = arith.mulf %1, %2 : vector<1x32xf32>
    %cst_3 = arith.constant dense<0xFF800000> : vector<1x32xf32>
    %4 = vector.multi_reduction <maximumf>, %0, %cst_3 [2] : vector<1x32x256xf32> to vector<1x32xf32>
    %5 = tpu.concatenate %3, %4 in 0 : vector<1x32xf32>, vector<1x32xf32> -> vector<2x32xf32>
    %cst_4 = arith.constant 0.000000e+00 : f32
    %6 = vector.broadcast %cst_4 : f32 to vector<2x32xf32>
    %c0_5 = arith.constant 0 : index
    %c0_6 = arith.constant 0 : index
    %7 = vector.load %arg2[%c0_5, %c0_6] : memref<2x32xf32, #tpu.memory_space<vmem>>, vector<1x32xf32>
    %8 = vector.broadcast %7 : vector<1x32xf32> to vector<2x32xf32>
    %9 = arith.mulf %5, %8 : vector<2x32xf32>
    %cst_7 = arith.constant dense<0.000000e+00> : vector<2xf32>
    %10 = vector.multi_reduction <add>, %9, %cst_7 [1] : vector<2x32xf32> to vector<2xf32>
    %11 = vector.shape_cast %10 : vector<2xf32> to vector<2x1xf32>
    %cst_8 = arith.constant 0.000000e+00 : f32
    %12 = vector.broadcast %cst_8 : f32 to vector<2x1xf32>
    %13 = arith.maximumf %11, %12 : vector<2x1xf32>
    %c0_9 = arith.constant 0 : index
    %c0_10 = arith.constant 0 : index
    %14 = vector.load %arg3[%c0_9, %c0_10] : memref<2x32xf32, #tpu.memory_space<vmem>>, vector<1x32xf32>
    %15 = vector.broadcast %13 : vector<2x1xf32> to vector<2x32xf32>
    %16 = vector.broadcast %14 : vector<1x32xf32> to vector<2x32xf32>
    %17 = arith.mulf %15, %16 : vector<2x32xf32>
    %18 = arith.addf %6, %17 : vector<2x32xf32>
    %c1 = arith.constant 1 : index
    %c0_11 = arith.constant 0 : index
    %19 = vector.load %arg2[%c1, %c0_11] : memref<2x32xf32, #tpu.memory_space<vmem>>, vector<1x32xf32>
    %20 = vector.broadcast %19 : vector<1x32xf32> to vector<2x32xf32>
    %21 = arith.mulf %5, %20 : vector<2x32xf32>
    %cst_12 = arith.constant dense<0.000000e+00> : vector<2xf32>
    %22 = vector.multi_reduction <add>, %21, %cst_12 [1] : vector<2x32xf32> to vector<2xf32>
    %23 = vector.shape_cast %22 : vector<2xf32> to vector<2x1xf32>
    %cst_13 = arith.constant 0.000000e+00 : f32
    %24 = vector.broadcast %cst_13 : f32 to vector<2x1xf32>
    %25 = arith.maximumf %23, %24 : vector<2x1xf32>
    %c1_14 = arith.constant 1 : index
    %c0_15 = arith.constant 0 : index
    %26 = vector.load %arg3[%c1_14, %c0_15] : memref<2x32xf32, #tpu.memory_space<vmem>>, vector<1x32xf32>
    %27 = vector.broadcast %25 : vector<2x1xf32> to vector<2x32xf32>
    %28 = vector.broadcast %26 : vector<1x32xf32> to vector<2x32xf32>
    %29 = arith.mulf %27, %28 : vector<2x32xf32>
    %30 = arith.addf %18, %29 : vector<2x32xf32>
    %31 = vector.extract_strided_slice %30 {offsets = [0, 0], sizes = [1, 32], strides = [1, 1]} : vector<2x32xf32> to vector<1x32xf32>
    %32 = vector.extract_strided_slice %30 {offsets = [1, 0], sizes = [1, 32], strides = [1, 1]} : vector<2x32xf32> to vector<1x32xf32>
    %33 = arith.addf %31, %32 : vector<1x32xf32>
    %34 = arith.negf %33 : vector<1x32xf32>
    %35 = math.exp %34 : vector<1x32xf32>
    %cst_16 = arith.constant 1.000000e+00 : f32
    %36 = vector.broadcast %cst_16 : f32 to vector<1x32xf32>
    %37 = arith.addf %36, %35 : vector<1x32xf32>
    %38 = arith.divf %36, %37 : vector<1x32xf32>
    %c0_17 = arith.constant 0 : index
    %c0_18 = arith.constant 0 : index
    %c0_19 = arith.constant 0 : index
    %39 = vector.load %arg1[%c0_17, %c0_18, %c0_19] : memref<1x32x256xf32, #tpu.memory_space<vmem>>, vector<1x32x256xf32>
    %40 = vector.shape_cast %38 : vector<1x32xf32> to vector<1x32x1xf32>
    %41 = vector.broadcast %40 : vector<1x32x1xf32> to vector<1x32x256xf32>
    %42 = arith.mulf %39, %41 : vector<1x32x256xf32>
    %c0_20 = arith.constant 0 : index
    %c0_21 = arith.constant 0 : index
    %c0_22 = arith.constant 0 : index
    %43 = vector.load %arg4[%c0_20, %c0_21, %c0_22] : memref<1x32x256xf32, #tpu.memory_space<vmem>>, vector<1x32x256xf32>
    tpu.vector_store %arg4[%c0_20, %c0_21, %c0_22], %42 {strides = array<i32>} : memref<1x32x256xf32, #tpu.memory_space<vmem>>, vector<1x32x256xf32>,
    return
  }
  func.func @transform_0(%arg0: i32) -> (i32, i32, i32) {
    %c0_i32 = arith.constant 0 : i32
    %c0_i32_0 = arith.constant 0 : i32
    %c0_i32_1 = arith.constant 0 : i32
    return %arg0, %c0_i32, %c0_i32_0 : i32, i32, i32
  }
  func.func @transform_1(%arg0: i32) -> (i32, i32) {
    %c0_i32 = arith.constant 0 : i32
    %c0_i32_0 = arith.constant 0 : i32
    %c0_i32_1 = arith.constant 0 : i32
    return %c0_i32, %c0_i32_0 : i32, i32
  }
  func.func @transform_2(%arg0: i32) -> (i32, i32) {
    %c0_i32 = arith.constant 0 : i32
    %c0_i32_0 = arith.constant 0 : i32
    %c0_i32_1 = arith.constant 0 : i32
    return %c0_i32, %c0_i32_0 : i32, i32
  }
  func.func @transform_3(%arg0: i32) -> (i32, i32, i32) {
    %c0_i32 = arith.constant 0 : i32
    %c0_i32_0 = arith.constant 0 : i32
    %c0_i32_1 = arith.constant 0 : i32
    return %arg0, %c0_i32, %c0_i32_0 : i32, i32, i32
  }
}

</mosaic_0001>

<bundles_post_ra>
// kernel: tpu_custom_call.1
= control target key start
LH: loop header
LB: loop body
LE: loop exit
PB: predicated region body
PF: predicated region fallthrough
CT: control target
= control target key end

     0   :  { %8 = vsyncpa [#allocation3], 0  ;;  %s876_s0 = inlined_call_operand.hbm [shape: f32[2,32,256], index: 0, kind: input, shape index: {}]   ;;  %s877_s1 = inlined_call_operand.vmem [shape: f32[2,32], index: 1, kind: input, shape index: {}]   ;;  %s878_s2 = inlined_call_operand.vmem [shape: f32[2,32], index: 2, kind: input, shape index: {}]   ;;  %s879_s3 = inlined_call_operand.hbm [shape: f32[2,32,256], index: 3, kind: output, shape index: {}]  }
   0x1   :  { %10 = vsyncpa [#allocation3 + $0x1], 0 }
   0x2   :  { %11 = vsyncpa [#allocation4], 0 }
   0x3   :  { %13 = vsyncpa [#allocation4 + $0x1], 0  ;;  %s649_s12 = smov 0   ;;  %s651_s13 = smov 0  }
   0x4   :  { %s653_s14 = smov 0   ;;  %s655_s15 = smov 0  }
   0x5 LB: > { %s670_s16 = sadd.s32 4294967295, %s621_s15   ;;  %s450_s17 = sadd.s32 4294967294, %s621_s15   ;;  %s621_s15 = sphi %s655_s15, %s892_s15   ;;  %s617_s14 = sphi %s653_s14, %s891_s14   ;;  %s613_s13 = sphi %s651_s13, %s890_s13   ;;  %s609_s12 = sphi %s649_s12, %s889_s12  }
   0x6   : > { %s674_s18 = sadd.s32 1, %s621_s15   ;;  %s26_s19 = sadd.s32 1, %s617_s14 }
   0x7   : > { %s23_s20 = ssub.s32 %s621_s15, %s674_s18  ;;  %p33_p0 = scmp.ne.s32.totalorder %s617_s14, %s613_s13 }
   0x8   : > { %p24_p1 = scmp.eq.s32.totalorder %s23_s20, 0  ;;  %p34_p2 = scmp.eq.s32.totalorder %s621_s15, 0 }
   0x9   : > { %p39_p3 = scmp.ne.s32.totalorder %s613_s13, %s609_s12  ;;  %p40_p4 = scmp.eq.s32.totalorder %s670_s16, 0 }
   0xa   : > { %s686_s21 = scalar_select %p24_p1, %s617_s14, %s26_s19  }
   0xb   : > { %p688_p5 = por %p34_p2, %p33_p0  ;;  %p692_p6 = por %p40_p4, %p39_p3 }
   0xc   : > { %p105_p7 = scmp.eq.s32.totalorder %s670_s16, 1  ;;  %p111_p8 = scmp.eq.s32.totalorder %s450_s17, 1 }
   0xd   : > { %p483_p10 = scmp.lt.s32.totalorder %s621_s15, 2  ;;  %s137_s26 = sand.u32 1, %s617_s14  }
   0xe   : > { %p699_p11 = por %p105_p7, %p33_p0  ;;  %p703_p12 = por %p111_p8, %p39_p3 }
   0xf   : > { %s469_s27 = sshll.u32 %s621_s15, 10  ;;  %s453_s28 = sshll.u32 %s137_s26, 6 }
  0x10   : > { %s883_s24 = scalar_select %p699_p11, 1, 0 }
  0x11   : > { %s884_s25 = scalar_select %p703_p12, 1, 0 }
  0x12   : > { %s712_s4 = scalar_lea.hbm %s876_s0, %s469_s27  ;;  %s141_s5 = scalar_lea.vmem [#allocation2], %s453_s28 }
  0x13   : > { %s148_s6 = sshll.u32 %s141_s5, 4  ;;  %p716_p13 = pnand %p483_p10, %p688_p5  ;;  %s720_s6 = int_to_ptr.vmem [resolvable:$true] %s148_s6 }
  0x14   : > { %s722_s8 = scalar_lea.sflag [#allocation3], %s137_s26  ;;  %s525_s9 = scalar_lea.hbm %s712_s4, 1024 }
  0x15   : > { %p526_p0 = scmp.ne.s32.totalorder %s712_s4, %s525_s9  ;;  %p527_p1 = pneg %p716_p13 }
  0x16   : > { %s530_s17 = scalar_lea.hbm %s876_s0, 2048  ;;  %p531_p4 = scmp.lt.u32.totalorder %s712_s4, %s876_s0 }
  0x17   : > { %p528_p2 = pnand %p527_p1, %p526_p0  ;;  %p532_p5 = scmp.lt.u32.totalorder %s530_s17, %s525_s9 }
  0x18   : > { %p534_p8 = scmp.lt.u32.totalorder %s525_s9, %s712_s4 }
  0x19   : > { %p529_p3 = pneg %p528_p2  ;;  %p533_p7 = por %p532_p5, %p531_p4 }
  0x1b   : > { %p535_p10 = por %p534_p8, %p533_p7 }
  0x1d   : > { %p536_p9 = pnand %p535_p10, %p529_p3 }
  0x1f   : > { %539 = shalt.err (!%p536_p9)
}
  0x20   : > { %s540_s22 = scalar_lea.vmem %s720_s6, 1024  ;;  %s623_s26 = smov [#allocation2]  }
  0x21   : > { %p541_p0 = scmp.ne.s32.totalorder %s720_s6, %s540_s22  ;;  %s545_s27 = sshll.u32 %s623_s26, 4  ;;  %s546_s27 = int_to_ptr.vmem [resolvable:$false] %s545_s27 }
  0x22   : > { %s547_s28 = scalar_lea.vmem %s546_s27, 2048  ;;  %p548_p11 = scmp.lt.s32.totalorder %s720_s6, %s546_s27 }
  0x23   : > { %p543_p2 = pnand %p541_p0, %p527_p1  ;;  %p549_p4 = scmp.lt.s32.totalorder %s547_s28, %s540_s22 }
  0x25   : > { %p544_p12 = pneg %p543_p2  ;;  %p550_p5 = por %p549_p4, %p548_p11 }
  0x27   : > { %p551_p7 = pnand %p550_p5, %p544_p12 }
  0x29   : > { %554 = shalt.err (!%p551_p7)
}
  0x2a   : > { %s624_s29 = smov 256   ;;  %s625_s30 = smov 16  }
  0x2b   : > { %478 = dma.hbm_to_vmem [thread:$0]  (!%p716_p13), %s712_s4, 1024, %s720_s6, %s722_s8, %s624_s29, %s624_s29, %s625_s30  }
  0x2c   : > { %p456_p9 = scmp.ge.s32.totalorder %s621_s15, 1  ;;  %p156_p1 = scmp.lt.s32.totalorder %s621_s15, 3 }
  0x2e   : > { %p157_p3 = pnand %p456_p9, %p156_p1 }
  0x2f   : > { %s753_s5 = sand.u32 (!%p157_p3), 1, %s613_s13  }
  0x30   : > { %160 = sbr.rel (%p157_p3) target bundleno = 542 (0x21e), region = 32  ;;  %s457_s9 = sshll.u32 (!%p157_p3), %s753_s5, 6 }
  0x31   : > { %s163_s10 = scalar_lea.sflag (!%p157_p3), [#allocation3], %s753_s5  ;;  %s166_s11 = scalar_lea.vmem (!%p157_p3), [#allocation2], %s457_s9 }
  0x37   : > { %600 = dma.done.wait (%p692_p6), %s163_s10, 1024  }
  0x38   : > { %602 = vsyncadd (%p692_p6), %s163_s10, 4294966272  ;;  %v763_v0 = vld [vmem:[%s166_s11 + $0x20] sm:$0xff]  ;;  %v765_v1 = vld [vmem:[%s166_s11 + $0x28] sm:$0xff]  ;;  %v229_v16 = vlaneseq  ;;  %vm240_vm0 = vcmask 130112   ;;  %vm247_vm1 = vcmask 195712   ;;  %vm254_vm2 = vcmask 261312  }
  0x39   : > { %v767_v2 = vld [vmem:[%s166_s11] sm:$0xff]  ;;  %v203_v3 = vadd.f32 %v765_v1, %v763_v0  ;;  %v771_v4 = vld [vmem:[%s166_s11 + $0x8] sm:$0xff]  ;;  %v773_v5 = vld [vmem:[%s166_s11 + $0x30] sm:$0xff]  ;;  %v219_v15 = vmax.f32 %v763_v0, %v765_v1  ;;  %vm281_vm3 = vcmask 1040384   ;;  %vm289_vm4 = vcmask 254976   ;;  %s188_s22 = scalar_lea.vmem [#allocation5], %s457_s9 }
  0x3a   : > { %v775_v6 = vld [vmem:[%s166_s11 + $0x38] sm:$0xff]  ;;  %v197_v7 = vadd.f32 %v771_v4, %v767_v2  ;;  %v779_v8 = vld [vmem:[%s166_s11 + $0x10] sm:$0xff]  ;;  %v213_v13 = vmax.f32 %v767_v2, %v771_v4  ;;  %v230_v17 = vand.u32 127, %v229_v16  ;;  %v795_v20 = vshrl.u32 %v229_v16, 7  ;;  %v461_v50 = vld [vmem:[%s877_s1 + $0x1] ss:$0 sm:$0xff] }
  0x3b   : > { %v781_v9 = vld [vmem:[%s166_s11 + $0x18] sm:$0xff]  ;;  %204 = vadd.xlane.f32.xlu1 %v203_v3  ;;  %v206_v10 = vadd.f32 %v775_v6, %v773_v5  ;;  %v222_v14 = vmax.f32 %v773_v5, %v775_v6  ;;  %v459_v51 = vld [vmem:[%s877_s1] ss:$0 sm:$0xff]  ;;  %v462_v59 = vld [vmem:[%s878_s2 + $0x1] ss:$0 sm:$0xff]  ;;  %s377_s26 = sshll.u32 %s188_s22, 4  ;;  %s825_s26 = int_to_ptr.vmem [resolvable:$true] %s377_s26 }
  0x3c   : > { %198 = vadd.xlane.f32.xlu0 %v197_v7  ;;  %v200_v11 = vadd.f32 %v781_v9, %v779_v8  ;;  %v216_v12 = vmax.f32 %v779_v8, %v781_v9  ;;  %v235_v19 = vadd.s32 4294967288, %v230_v17  ;;  %v242_v22 = vadd.s32 4294967280, %v230_v17  ;;  %v460_v61 = vld [vmem:[%s878_s2] ss:$0 sm:$0xff]  ;;  %s470_s27 = sshll.u32 %s670_s16, 10  ;;  %s364_s16 = scalar_lea.sflag [#allocation4], %s753_s5 }
  0x3d   : > { %v233_v25 = vsub.s32 %v230_v17, %v795_v20  ;;  %v249_v27 = vadd.s32 4294967272, %v230_v17  ;;  %v330_v17 = vsub.s32 0, %v795_v20  ;;  %s830_s30 = scalar_lea.hbm %s879_s3, %s470_s27  ;;  %s555_s9 = scalar_lea.vmem %s825_s26, 1024 }
  0x3e   : > { %v238_v24 = vsub.s32 %v235_v19, %v795_v20  ;;  %v245_v30 = vsub.s32 %v242_v22, %v795_v20  ;;  %p556_p6 = scmp.ne.s32.totalorder %s825_s26, %s555_s9  ;;  %p886_p11 = scmp.ne.s32.totalorder %s883_s24, 0 }
  0x3f   : > { %207 = vadd.xlane.f32.xlu1 %v206_v10  ;;  %v252_v35 = vsub.s32 %v249_v27, %v795_v20  ;;  %s626_s10 = smov [#allocation5]  }
  0x40   : > { %201 = vadd.xlane.f32.xlu0 %v200_v11  ;;  %p557_p12 = pnand %p556_p6, %p886_p11  ;;  %s559_s11 = sshll.u32 %s626_s10, 4  ;;  %s560_s11 = int_to_ptr.vmem [resolvable:$false] %s559_s11 }
  0x41   : > { %s561_s23 = scalar_lea.vmem %s560_s11, 2048  ;;  %p562_p8 = scmp.lt.s32.totalorder %s825_s26, %s560_s11 }
  0x42   : > { %p558_p13 = pneg %p557_p12  ;;  %p563_p10 = scmp.lt.s32.totalorder %s561_s23, %s555_s9 }
  0x43   : > { %217 = vmax.xlane.f32.xlu1 %v216_v12 }
  0x44   : > { %214 = vmax.xlane.f32.xlu0 %v213_v13  ;;  %p564_p0 = por %p563_p10, %p562_p8 }
  0x46   : > { %p565_p2 = pnand %p564_p0, %p558_p13 }
  0x47   : > { %223 = vmax.xlane.f32.xlu1 %v222_v14 }
  0x48   : > { %220 = vmax.xlane.f32.xlu0 %v219_v15 }
  0xc8   : > { %v205_v18 = vpop.xlane.xlu1 %204 }
  0xc9   : > { %v199_v21 = vpop.xlane.xlu0 %198  ;;  %v211_v31 = vmul.f32 0.00390625, %v205_v18 }
  0xca   : > { %v209_v26 = vmul.f32 0.00390625, %v199_v21 }
  0xcb   : > { %v246_v41 = vrot.slane %v211_v31, %v245_v30 }
  0xcc   : > { %v208_v23 = vpop.xlane.xlu1 %207  ;;  %v234_v34 = vrot.slane %v209_v26, %v233_v25 }
  0xcd   : > { %v202_v28 = vpop.xlane.xlu0 %201  ;;  %v212_v36 = vmul.f32 0.00390625, %v208_v23 }
  0xce   : > { %v210_v29 = vmul.f32 0.00390625, %v202_v28 }
  0xcf   : > { %v253_v43 = vrot.slane %v212_v36, %v252_v35 }
  0xd0   : > { %v239_v32 = vrot.slane %v210_v29, %v238_v24  ;;  %v218_v33 = vpop.xlane.xlu1 %217 }
  0xd1   : > { %v215_v37 = vpop.xlane.xlu0 %214  ;;  %v268_v39 = vrot.slane %v218_v33, %v238_v24 }
  0xd2   : > { %v241_v38 = vsel %vm240_vm0, %v239_v32, %v234_v34  ;;  %v264_v40 = vrot.slane %v215_v37, %v233_v25 }
  0xd3   : > { %v248_v47 = vsel %vm247_vm1, %v246_v41, %v241_v38 }
  0xd4   : > { %v224_v42 = vpop.xlane.xlu1 %223  ;;  %v269_v48 = vsel %vm240_vm0, %v268_v39, %v264_v40  ;;  %v255_v53 = vsel %vm254_vm2, %v253_v43, %v248_v47 }
  0xd5   : > { %v221_v44 = vpop.xlane.xlu0 %220  ;;  %v278_v45 = vrot.slane %v224_v42, %v252_v35 }
  0xd6   : > { %v273_v46 = vrot.slane %v221_v44, %v245_v30 }
  0xd8   : > { %v274_v49 = vsel %vm247_vm1, %v273_v46, %v269_v48 }
  0xd9   : > { %v279_v52 = vsel %vm254_vm2, %v278_v45, %v274_v49 }
  0xda   : > { %v282_v54 = vsel %vm281_vm3, %v255_v53, %v279_v52 }
  0xdb   : > { %v306_v55 = vmul.f32 %v461_v50, %v282_v54  ;;  %v288_v56 = vmul.f32 %v459_v51, %v282_v54 }
  0xdd   : > { %v307_v57 = vsel %vm289_vm4, %v306_v55, 0.0  ;;  %v290_v58 = vsel %vm289_vm4, %v288_v56, 0.0 }
  0xde   : > { %308 = vadd.xlane.f32.xlu1 %v307_v57  ;;  %291 = vadd.xlane.f32.xlu0 %v290_v58 }
 0x16b   : > { %v309_v60 = vpop.xlane.xlu1 %308  ;;  %v292_v62 = vpop.xlane.xlu0 %291 }
 0x16c   : > { %v310_v63 = vmax.f32 %v309_v60, 0.0  ;;  %v293_v3 = vmax.f32 %v292_v62, 0.0 }
 0x16e   : > { %v316_v7 = vmul.f32 %v462_v59, %v310_v63  ;;  %v299_v10 = vmul.f32 %v460_v61, %v293_v3 }
 0x170   : > { %v317_v11 = vadd.f32 %v316_v7, %v299_v10 }
 0x172   : > { %v319_v12 = vrot.slane %v317_v11, 1 }
 0x174   : > { %v321_v13 = vadd.f32 %v319_v12, %v317_v11 }
 0x176   : > { %v463_v14 = vmul.f32 -1.442695, %v321_v13 }
 0x178   : > { %521 = vpow2.f32 %v463_v14 }
 0x182   : > { %v522_v15 = vpop.eup %521 }
 0x183   : > { %v325_v16 = vadd.f32 1.0, %v522_v15 }
 0x185   : > { %523 = vrcp.f32 %v325_v16 }
 0x18f   : > { %v524_v18 = vpop.eup %523 }
 0x190   : > { %v331_v19 = vrot.slane %v524_v18, %v330_v17 }
 0x192   : > { %337 = vbcast.lane.b32.xlu1 %v331_v19, 264  ;;  %333 = vbcast.lane.b32.xlu0 %v331_v19, 256 }
 0x196   : > { %341 = vbcast.lane.b32.xlu1 %v331_v19, 272 }
 0x19a   : > { %345 = vbcast.lane.b32.xlu1 %v331_v19, 280 }
 0x204   : > { %v338_v21 = vpop.permute.xlu1 %337  ;;  %v334_v22 = vpop.permute.xlu0 %333 }
 0x205   : > { %v349_v23 = vmul.f32 %v338_v21, %v779_v8  ;;  %v350_v24 = vmul.f32 %v338_v21, %v781_v9  ;;  %v347_v25 = vmul.f32 %v334_v22, %v767_v2  ;;  %v348_v26 = vmul.f32 %v334_v22, %v771_v4 }
 0x207   : > { %357 = vst [vmem:[%s188_s22 + $0x10] sm:$0xff] %v349_v23  ;;  %358 = vst [vmem:[%s188_s22 + $0x18] sm:$0xff] %v350_v24 }
 0x208   : > { %355 = vst [vmem:[%s188_s22] sm:$0xff] %v347_v25  ;;  %356 = vst [vmem:[%s188_s22 + $0x8] sm:$0xff] %v348_v26  ;;  %v342_v20 = vpop.permute.xlu1 %341 }
 0x209   : > { %v351_v27 = vmul.f32 %v342_v20, %v763_v0  ;;  %v352_v8 = vmul.f32 %v342_v20, %v765_v1 }
 0x20b   : > { %359 = vst [vmem:[%s188_s22 + $0x20] sm:$0xff] %v351_v27  ;;  %360 = vst [vmem:[%s188_s22 + $0x28] sm:$0xff] %v352_v8 }
 0x20c   : > { %v346_v2 = vpop.permute.xlu1 %345 }
 0x20d   : > { %v353_v4 = vmul.f32 %v346_v2, %v773_v5  ;;  %v354_v0 = vmul.f32 %v346_v2, %v775_v6 }
 0x20f   : > { %361 = vst [vmem:[%s188_s22 + $0x30] sm:$0xff] %v353_v4  ;;  %362 = vst [vmem:[%s188_s22 + $0x38] sm:$0xff] %v354_v0 }
 0x210   : > { %568 = shalt.err (!%p565_p2)
}
 0x211   : > { %s569_s4 = scalar_lea.hbm %s830_s30, 1024  ;;  %s573_s8 = scalar_lea.hbm %s879_s3, 2048 }
 0x212   : > { %p570_p4 = scmp.ne.s32.totalorder %s830_s30, %s569_s4  ;;  %p574_p9 = scmp.lt.u32.totalorder %s830_s30, %s879_s3 }
 0x213   : > { %p575_p1 = scmp.lt.u32.totalorder %s573_s8, %s569_s4  ;;  %p577_p6 = scmp.lt.u32.totalorder %s569_s4, %s830_s30 }
 0x214   : > { %p571_p5 = pnand %p570_p4, %p886_p11 }
 0x215   : > { %p576_p3 = por %p575_p1, %p574_p9 }
 0x216   : > { %p572_p7 = pneg %p571_p5 }
 0x217   : > { %p578_p12 = por %p577_p6, %p576_p3 }
 0x219   : > { %p579_p13 = pnand %p578_p12, %p572_p7 }
 0x21b   : > { %582 = shalt.err (!%p579_p13)
}
 0x21c   : > { %s627_s20 = smov 256   ;;  %s628_s22 = smov 16  }
 0x21d   : > { %473 = dma.vmem_to_hbm [thread:$0]  (%p886_p11), %s825_s26, 1024, %s830_s30, %s364_s16, %s627_s20, %s627_s20, %s628_s22  }
 0x21e PF: > { %s392_s27 = sand.u32 1, %s609_s12   ;;  %p887_p8 = scmp.ne.s32.totalorder %s884_s25, 0 }
 0x21f   : > { %p888_p10 = scmp.ge.s32.totalorder %s621_s15, 2  ;;  %s393_s28 = scalar_lea.sflag [#allocation4], %s392_s27 }
 0x221   : > { %p480_p0 = pnand %p888_p10, %p887_p8 }
 0x223   : > { %604 = dma.done.wait (!%p480_p0), %s393_s28, 1024  }
 0x224   : > { %606 = vsyncadd (!%p480_p0), %s393_s28, 4294966272  ;;  %p16_p2 = scmp.ge.s32.totalorder %s674_s18, 4   ;;  %s889_s12 = smov %s613_s13 }
 0x225   : > { %s890_s13 = smov %s617_s14  ;;  %s891_s14 = smov %s686_s21 }
 0x226   : > { %s892_s15 = smov %s674_s18  ;;  %18 = sbr.rel (!%p16_p2) target bundleno = 5 (0x5), region = 77 }
 0x22d   :  { %398 = vsyncpa [#allocation3], 1 }
 0x22e   :  { %400 = vsyncpa [#allocation3 + $0x1], 1 }
 0x22f   :  { %401 = vsyncpa [#allocation4], 1 }
 0x230   :  { %403 = vsyncpa [#allocation4 + $0x1], 1 }

</bundles_post_ra>
